<compile_context>
chip_gen: v6e
topology: v6e:2x2x1
jax: 0.10.0
libtpu: 0.0.40
codegen_flags: <defaults>
</compile_context>

<pallas_src>
import functools

import jax
import jax.numpy as jnp
from jax.experimental import pallas as pl
from jax.experimental.pallas import tpu as pltpu

NEG_SLOPE = 0.2
BN_EPS = 1e-5
_LANE = 128
_SUBL = 16                       # row-tile granularity (safe for bf16 blocks)
_VMEM_BUDGET = 40 * 1024 * 1024  # tile-sizing budget (fits v7x's 64 MiB VMEM)
_VMEM_LIMIT = 48 * 1024 * 1024   # explicit scoped-VMEM limit for the compiler


# ---------------------------------------------------------------------------
# Small helpers
# ---------------------------------------------------------------------------
def _round_up(x, m):
    return ((x + m - 1) // m) * m


def _pad2d(a, rows, cols):
    r, c = a.shape
    return jnp.pad(a, ((0, rows - r), (0, cols - c)))


def _choose_tm(m, k_pad, n_pad, out_itemsize, want=512):
    """Largest row tile (multiple of 16) whose double-buffered footprint fits."""
    tm = min(want, _round_up(m, _SUBL))
    tm = max(_SUBL, (tm // _SUBL) * _SUBL)

    def need(t):
        # 2 buffers each for the patches tile (bf16) and output tile, plus the
        # resident bf16 weight block and a little slack for small operands.
        return 2 * (t * k_pad * 2 + t * n_pad * out_itemsize) \
            + k_pad * n_pad * 2 + 8 * n_pad * 4

    while tm > _SUBL and need(tm) > _VMEM_BUDGET:
        tm = max(_SUBL, ((tm // 2) // _SUBL) * _SUBL)
    return tm


def _compiler_params(semantics):
    return pltpu.CompilerParams(
        dimension_semantics=semantics,
        vmem_limit_bytes=_VMEM_LIMIT,
    )


# ---------------------------------------------------------------------------
# Pallas kernels
# ---------------------------------------------------------------------------
def _matmul_act_kernel(p_ref, w_ref, o_ref, *, activation):
    """One M-tile of conv-as-matmul (bf16 x bf16 -> f32) + fused activation."""
    acc = jnp.dot(p_ref[...], w_ref[...], preferred_element_type=jnp.float32)
    if activation == "lrelu":
        acc = jnp.where(acc >= 0, acc, NEG_SLOPE * acc)
    elif activation == "sigmoid":
        acc = jax.nn.sigmoid(acc)
    o_ref[...] = acc.astype(o_ref.dtype)


def _matmul_stats_kernel(p_ref, w_ref, g_ref, b_ref, y_ref, aff_ref,
                         sum_sc, ssq_sc, *, m_total):
    """Pass 1 of BN layer: tiled conv matmul + global batch-stat accumulation.

    The M grid axis must be 'arbitrary' (accumulator carried in VMEM scratch).
    On the last tile the running sums are turned into the fused BN affine:
      scale = gamma * rsqrt(var + eps),  shift = beta - mean * scale.
    Zero-padded rows contribute zero to the sums; we divide by the *real* M.
    """
    i = pl.program_id(0)
    acc = jnp.dot(p_ref[...], w_ref[...], preferred_element_type=jnp.float32)
    y_ref[...] = acc.astype(y_ref.dtype)

    @pl.when(i == 0)
    def _():
        sum_sc[...] = jnp.zeros_like(sum_sc)
        ssq_sc[...] = jnp.zeros_like(ssq_sc)

    sum_sc[...] += jnp.sum(acc, axis=0, keepdims=True)
    ssq_sc[...] += jnp.sum(acc * acc, axis=0, keepdims=True)

    @pl.when(i == pl.num_programs(0) - 1)
    def _():
        inv_m = 1.0 / m_total
        mean = sum_sc[...] * inv_m
        var = ssq_sc[...] * inv_m - mean * mean
        scale = g_ref[...] * jax.lax.rsqrt(var + BN_EPS)
        shift = b_ref[...] - mean * scale
        aff_ref[...] = jnp.concatenate([scale, shift], axis=0)


def _bn_apply_lrelu_kernel(y_ref, aff_ref, o_ref):
    """Pass 2 of BN layer: y * scale + shift, then LeakyReLU (all f32 math)."""
    y = y_ref[...]
    scale = aff_ref[0:1, :]
    shift = aff_ref[1:2, :]
    z = y * scale + shift
    o_ref[...] = jnp.where(z >= 0, z, NEG_SLOPE * z).astype(o_ref.dtype)


# ---------------------------------------------------------------------------
# pallas_call wrappers
# ---------------------------------------------------------------------------
def pallas_conv_act(patches, w2d, activation, out_dtype, tm):
    m_pad, k_pad = patches.shape
    n_pad = w2d.shape[1]
    grid = (m_pad // tm,)
    out_isize = jnp.dtype(out_dtype).itemsize
    cost = pl.CostEstimate(
        flops=2 * m_pad * k_pad * n_pad,
        transcendentals=(m_pad * n_pad if activation == "sigmoid" else 0),
        bytes_accessed=m_pad * k_pad * 2 + k_pad * n_pad * 2 + m_pad * n_pad * out_isize,
    )
    return pl.pallas_call(
        functools.partial(_matmul_act_kernel, activation=activation),
        out_shape=jax.ShapeDtypeStruct((m_pad, n_pad), out_dtype),
        grid=grid,
        in_specs=[
            pl.BlockSpec((tm, k_pad), lambda i: (i, 0)),
            pl.BlockSpec((k_pad, n_pad), lambda i: (0, 0)),   # resident weights
        ],
        out_specs=pl.BlockSpec((tm, n_pad), lambda i: (i, 0)),
        compiler_params=_compiler_params(("parallel",)),
        cost_estimate=cost,
    )(patches, w2d)


def pallas_conv_stats(patches, w2d, gamma, beta, tm, m_real):
    m_pad, k_pad = patches.shape
    n_pad = w2d.shape[1]
    grid = (m_pad // tm,)
    cost = pl.CostEstimate(
        flops=2 * m_pad * k_pad * n_pad + 4 * m_pad * n_pad,
        transcendentals=n_pad,
        bytes_accessed=m_pad * k_pad * 2 + k_pad * n_pad * 2
        + m_pad * n_pad * 4 + 4 * n_pad * 4,
    )
    return pl.pallas_call(
        functools.partial(_matmul_stats_kernel, m_total=float(m_real)),
        out_shape=(
            jax.ShapeDtypeStruct((m_pad, n_pad), jnp.float32),   # raw conv out
            jax.ShapeDtypeStruct((2, n_pad), jnp.float32),       # (scale, shift)
        ),
        grid=grid,
        in_specs=[
            pl.BlockSpec((tm, k_pad), lambda i: (i, 0)),
            pl.BlockSpec((k_pad, n_pad), lambda i: (0, 0)),
            pl.BlockSpec((1, n_pad), lambda i: (0, 0)),
            pl.BlockSpec((1, n_pad), lambda i: (0, 0)),
        ],
        out_specs=(
            pl.BlockSpec((tm, n_pad), lambda i: (i, 0)),
            pl.BlockSpec((2, n_pad), lambda i: (0, 0)),          # resident/finalized
        ),
        scratch_shapes=[
            pltpu.VMEM((1, n_pad), jnp.float32),
            pltpu.VMEM((1, n_pad), jnp.float32),
        ],
        compiler_params=_compiler_params(("arbitrary",)),
        cost_estimate=cost,
    )(patches, w2d, gamma, beta)


def pallas_bn_apply_lrelu(y, affine, tm):
    m_pad, n_pad = y.shape
    grid = (m_pad // tm,)
    cost = pl.CostEstimate(
        flops=3 * m_pad * n_pad,
        transcendentals=0,
        bytes_accessed=m_pad * n_pad * 4 + 2 * n_pad * 4 + m_pad * n_pad * 2,
    )
    return pl.pallas_call(
        _bn_apply_lrelu_kernel,
        out_shape=jax.ShapeDtypeStruct((m_pad, n_pad), jnp.bfloat16),
        grid=grid,
        in_specs=[
            pl.BlockSpec((tm, n_pad), lambda i: (i, 0)),
            pl.BlockSpec((2, n_pad), lambda i: (0, 0)),
        ],
        out_specs=pl.BlockSpec((tm, n_pad), lambda i: (i, 0)),
        compiler_params=_compiler_params(("parallel",)),
        cost_estimate=cost,
    )(y, affine)


# ---------------------------------------------------------------------------
# Glue: im2col, weight layout conversion, layer wrappers, parameter init
# ---------------------------------------------------------------------------
def im2col(x_nhwc, k, stride, pad):
    if pad:
        x_nhwc = jnp.pad(x_nhwc, ((0, 0), (pad, pad), (pad, pad), (0, 0)))
    B, H, W, _ = x_nhwc.shape
    OH = (H - k) // stride + 1
    OW = (W - k) // stride + 1
    cols = []
    for kh in range(k):
        for kw in range(k):
            cols.append(
                x_nhwc[:, kh:kh + stride * OH:stride, kw:kw + stride * OW:stride, :]
            )
    patches = jnp.stack(cols, axis=3)  # [B, OH, OW, k*k, Cin]
    return patches.reshape(B * OH * OW, -1), B, OH, OW


def torch_w_to_2d(w_oihw):
    # PyTorch Conv2d weight [Cout, Cin, KH, KW] -> [KH*KW*Cin, Cout],
    # matching the (kh, kw, cin) ordering of im2col above.
    cout, cin, kh, kw = w_oihw.shape
    return jnp.transpose(w_oihw, (2, 3, 1, 0)).reshape(kh * kw * cin, cout)


def _prep_operands(x_nhwc, w_oihw, k, stride, pad, out_itemsize):
    patches, B, OH, OW = im2col(x_nhwc, k, stride, pad)
    M, K = patches.shape
    Cout = w_oihw.shape[0]
    K_pad = _round_up(K, _LANE)
    N_pad = _round_up(Cout, _LANE)
    tm = _choose_tm(M, K_pad, N_pad, out_itemsize)
    M_pad = _round_up(M, tm)
    p = _pad2d(patches, M_pad, K_pad).astype(jnp.bfloat16)
    w = _pad2d(torch_w_to_2d(w_oihw), K_pad, N_pad).astype(jnp.bfloat16)
    return p, w, tm, (M, Cout, B, OH, OW, N_pad)


def _conv_act_layer(x_nhwc, w_oihw, k, stride, pad, activation, out_dtype):
    p, w, tm, (M, Cout, B, OH, OW, _) = _prep_operands(
        x_nhwc, w_oihw, k, stride, pad, jnp.dtype(out_dtype).itemsize)
    y = pallas_conv_act(p, w, activation, out_dtype, tm)
    return y[:M, :Cout].reshape(B, OH, OW, Cout)


def _conv_bn_lrelu_layer(x_nhwc, w_oihw, gamma, beta, k, stride, pad):
    p, w, tm, (M, Cout, B, OH, OW, N_pad) = _prep_operands(
        x_nhwc, w_oihw, k, stride, pad, 4)
    g = _pad2d(gamma.astype(jnp.float32), 1, N_pad)
    b = _pad2d(beta.astype(jnp.float32), 1, N_pad)
    y, affine = pallas_conv_stats(p, w, g, b, tm, m_real=M)
    out = pallas_bn_apply_lrelu(y, affine, tm)
    return out[:M, :Cout].reshape(B, OH, OW, Cout)


def init_params(cf, key):
    nc, ndf = cf["nc"], cf["ndf"]
    k1, k2, k3, k4 = jax.random.split(key, 4)
    return {
        # DCGAN init: conv weights ~ N(0, 0.02), BN gamma ~ N(1, 0.02), beta = 0.
        "w1": 0.02 * jax.random.normal(k1, (ndf, nc, 4, 4), jnp.float32),
        "w2": 0.02 * jax.random.normal(k2, (2 * ndf, ndf, 4, 4), jnp.float32),
        "bn2_g": 1.0 + 0.02 * jax.random.normal(k3, (1, 2 * ndf), jnp.float32),
        "bn2_b": jnp.zeros((1, 2 * ndf), jnp.float32),
        "w3": 0.02 * jax.random.normal(k4, (1, 2 * ndf, 4, 4), jnp.float32),
    }


def discriminator_forward(params, x_nchw):
    x = jnp.transpose(x_nchw, (0, 2, 3, 1))  # NCHW -> NHWC

    # layer 1: Conv(nc -> ndf, 4, 2, 1) + LeakyReLU(0.2)   (bf16 activations)
    x = _conv_act_layer(x, params["w1"], 4, 2, 1, "lrelu", jnp.bfloat16)

    # layer 2: Conv(ndf -> 2ndf, 4, 2, 1) + BatchNorm2d + LeakyReLU(0.2)
    x = _conv_bn_lrelu_layer(x, params["w2"], params["bn2_g"], params["bn2_b"],
                             4, 2, 1)

    # layer 3: Conv(2ndf -> 1, 4, 1, 0) + Sigmoid           (f32 output)
    y = _conv_act_layer(x, params["w3"], 4, 1, 0, "sigmoid", jnp.float32)

    return jnp.transpose(y, (0, 3, 1, 2))  # back to NCHW: [B, 1, 1, 1]


if __name__ == "__main__":
    cf = {"nc": 4, "ndf": 8}
    key = jax.random.PRNGKey(0)
    pkey, xkey = jax.random.split(key)

    params = init_params(cf, pkey)
    x = jax.random.normal(xkey, (2, cf["nc"], 16, 16), jnp.float32)  # NCHW

    fwd = jax.jit(discriminator_forward)
    out = fwd(params, x)
    jax.block_until_ready(out)

    assert out.shape == (2, 1, 1, 1), out.shape
    assert bool(jnp.all((out >= 0.0) & (out <= 1.0))), "sigmoid range violated"
    print("KERNEL_OK")
</pallas_src>

<mosaic_0001>
module attributes {stable_mosaic.version = 11 : i64} {
  func.func @_matmul_act_kernel(%arg0: i32, %arg1: memref<128x128xbf16, #tpu.memory_space<vmem>>, %arg2: memref<128x128xbf16, #tpu.memory_space<vmem>>, %arg3: memref<128x128xbf16, #tpu.memory_space<vmem>>) attributes {dimension_semantics = [#tpu.dimension_semantics<parallel>], iteration_bounds = array<i64: 1>, scalar_prefetch = 0 : i64, scratch_operands = 0 : i64, tpu.core_type = #tpu.core_type<tc>, window_params = [{transform_indices = @transform_0, window_bounds = array<i64: 128, 128>}, {pipeline_mode = #tpu.pipeline_mode<synchronous>, transform_indices = @transform_1, window_bounds = array<i64: 128, 128>}, {transform_indices = @transform_2, window_bounds = array<i64: 128, 128>}]} {
    %c0 = arith.constant 0 : index
    %c0_0 = arith.constant 0 : index
    %0 = vector.load %arg1[%c0, %c0_0] : memref<128x128xbf16, #tpu.memory_space<vmem>>, vector<128x128xbf16>
    %c0_1 = arith.constant 0 : index
    %c0_2 = arith.constant 0 : index
    %1 = vector.load %arg2[%c0_1, %c0_2] : memref<128x128xbf16, #tpu.memory_space<vmem>>, vector<128x128xbf16>
    %cst = arith.constant dense<0.000000e+00> : vector<128x128xf32>
    %2 = tpu.matmul %0, %1, %cst {dimension_numbers = #tpu.dot_dimension_numbers<[1], [0], [0], [1], [0, 0, 1, 1], [], []>} : vector<128x128xbf16>, vector<128x128xbf16>, vector<128x128xf32> -> vector<128x128xf32>
    %cst_3 = arith.constant 0.000000e+00 : f32
    %3 = vector.broadcast %cst_3 : f32 to vector<128x128xf32>
    %4 = arith.cmpf oge, %2, %3 : vector<128x128xf32>
    %cst_4 = arith.constant 2.000000e-01 : f32
    %5 = vector.broadcast %cst_4 : f32 to vector<128x128xf32>
    %6 = arith.mulf %5, %2 : vector<128x128xf32>
    %7 = arith.select %4, %2, %6 : vector<128x128xi1>, vector<128x128xf32>
    %8 = arith.truncf %7 : vector<128x128xf32> to vector<128x128xbf16>
    %c0_5 = arith.constant 0 : index
    %c0_6 = arith.constant 0 : index
    %9 = vector.load %arg3[%c0_5, %c0_6] : memref<128x128xbf16, #tpu.memory_space<vmem>>, vector<128x128xbf16>
    tpu.vector_store %arg3[%c0_5, %c0_6], %8 {strides = array<i32>} : memref<128x128xbf16, #tpu.memory_space<vmem>>, vector<128x128xbf16>,
    return
  }
  func.func @transform_0(%arg0: i32) -> (i32, i32) {
    %c0_i32 = arith.constant 0 : i32
    %c0_i32_0 = arith.constant 0 : i32
    return %arg0, %c0_i32 : i32, i32
  }
  func.func @transform_1(%arg0: i32) -> (i32, i32) {
    %c0_i32 = arith.constant 0 : i32
    %c0_i32_0 = arith.constant 0 : i32
    %c0_i32_1 = arith.constant 0 : i32
    return %c0_i32, %c0_i32_0 : i32, i32
  }
  func.func @transform_2(%arg0: i32) -> (i32, i32) {
    %c0_i32 = arith.constant 0 : i32
    %c0_i32_0 = arith.constant 0 : i32
    return %arg0, %c0_i32 : i32, i32
  }
}

module attributes {stable_mosaic.version = 11 : i64} {
  func.func @_bn_apply_lrelu_kernel(%arg0: i32, %arg1: memref<32x128xf32, #tpu.memory_space<vmem>>, %arg2: memref<2x128xf32, #tpu.memory_space<vmem>>, %arg3: memref<32x128xbf16, #tpu.memory_space<vmem>>) attributes {dimension_semantics = [#tpu.dimension_semantics<parallel>], iteration_bounds = array<i64: 1>, scalar_prefetch = 0 : i64, scratch_operands = 0 : i64, tpu.core_type = #tpu.core_type<tc>, window_params = [{transform_indices = @transform_0, window_bounds = array<i64: 32, 128>}, {pipeline_mode = #tpu.pipeline_mode<synchronous>, transform_indices = @transform_1, window_bounds = array<i64: 2, 128>}, {transform_indices = @transform_2, window_bounds = array<i64: 32, 128>}]} {
    %c0 = arith.constant 0 : index
    %c0_0 = arith.constant 0 : index
    %0 = vector.load %arg1[%c0, %c0_0] : memref<32x128xf32, #tpu.memory_space<vmem>>, vector<32x128xf32>
    %c0_1 = arith.constant 0 : index
    %c0_2 = arith.constant 0 : index
    %1 = vector.load %arg2[%c0_1, %c0_2] : memref<2x128xf32, #tpu.memory_space<vmem>>, vector<1x128xf32>
    %c1 = arith.constant 1 : index
    %c0_3 = arith.constant 0 : index
    %2 = vector.load %arg2[%c1, %c0_3] : memref<2x128xf32, #tpu.memory_space<vmem>>, vector<1x128xf32>
    %3 = vector.broadcast %1 : vector<1x128xf32> to vector<32x128xf32>
    %4 = arith.mulf %0, %3 : vector<32x128xf32>
    %5 = vector.broadcast %2 : vector<1x128xf32> to vector<32x128xf32>
    %6 = arith.addf %4, %5 : vector<32x128xf32>
    %cst = arith.constant 0.000000e+00 : f32
    %7 = vector.broadcast %cst : f32 to vector<32x128xf32>
    %8 = arith.cmpf oge, %6, %7 : vector<32x128xf32>
    %cst_4 = arith.constant 2.000000e-01 : f32
    %9 = vector.broadcast %cst_4 : f32 to vector<32x128xf32>
    %10 = arith.mulf %9, %6 : vector<32x128xf32>
    %11 = arith.select %8, %6, %10 : vector<32x128xi1>, vector<32x128xf32>
    %12 = arith.truncf %11 : vector<32x128xf32> to vector<32x128xbf16>
    %c0_5 = arith.constant 0 : index
    %c0_6 = arith.constant 0 : index
    %13 = vector.load %arg3[%c0_5, %c0_6] : memref<32x128xbf16, #tpu.memory_space<vmem>>, vector<32x128xbf16>
    tpu.vector_store %arg3[%c0_5, %c0_6], %12 {strides = array<i32>} : memref<32x128xbf16, #tpu.memory_space<vmem>>, vector<32x128xbf16>,
    return
  }
  func.func @transform_0(%arg0: i32) -> (i32, i32) {
    %c0_i32 = arith.constant 0 : i32
    %c0_i32_0 = arith.constant 0 : i32
    return %arg0, %c0_i32 : i32, i32
  }
  func.func @transform_1(%arg0: i32) -> (i32, i32) {
    %c0_i32 = arith.constant 0 : i32
    %c0_i32_0 = arith.constant 0 : i32
    %c0_i32_1 = arith.constant 0 : i32
    return %c0_i32, %c0_i32_0 : i32, i32
  }
  func.func @transform_2(%arg0: i32) -> (i32, i32) {
    %c0_i32 = arith.constant 0 : i32
    %c0_i32_0 = arith.constant 0 : i32
    return %arg0, %c0_i32 : i32, i32
  }
}

module attributes {stable_mosaic.version = 11 : i64} {
  func.func @_matmul_stats_kernel(%arg0: i32, %arg1: memref<32x128xbf16, #tpu.memory_space<vmem>>, %arg2: memref<128x128xbf16, #tpu.memory_space<vmem>>, %arg3: memref<1x128xf32, #tpu.memory_space<vmem>>, %arg4: memref<1x128xf32, #tpu.memory_space<vmem>>, %arg5: memref<32x128xf32, #tpu.memory_space<vmem>>, %arg6: memref<2x128xf32, #tpu.memory_space<vmem>>, %arg7: memref<1x128xf32, #tpu.memory_space<vmem>>, %arg8: memref<1x128xf32, #tpu.memory_space<vmem>>) attributes {dimension_semantics = [#tpu.dimension_semantics<arbitrary>], iteration_bounds = array<i64: 1>, scalar_prefetch = 0 : i64, scratch_operands = 2 : i64, tpu.core_type = #tpu.core_type<tc>, window_params = [{transform_indices = @transform_0, window_bounds = array<i64: 32, 128>}, {pipeline_mode = #tpu.pipeline_mode<synchronous>, transform_indices = @transform_1, window_bounds = array<i64: 128, 128>}, {pipeline_mode = #tpu.pipeline_mode<synchronous>, transform_indices = @transform_2, window_bounds = array<i64: 1, 128>}, {pipeline_mode = #tpu.pipeline_mode<synchronous>, transform_indices = @transform_3, window_bounds = array<i64: 1, 128>}, {transform_indices = @transform_4, window_bounds = array<i64: 32, 128>}, {pipeline_mode = #tpu.pipeline_mode<synchronous>, transform_indices = @transform_5, window_bounds = array<i64: 2, 128>}]} {
    %c0 = arith.constant 0 : index
    %c0_0 = arith.constant 0 : index
    %0 = vector.load %arg1[%c0, %c0_0] : memref<32x128xbf16, #tpu.memory_space<vmem>>, vector<32x128xbf16>
    %c0_1 = arith.constant 0 : index
    %c0_2 = arith.constant 0 : index
    %1 = vector.load %arg2[%c0_1, %c0_2] : memref<128x128xbf16, #tpu.memory_space<vmem>>, vector<128x128xbf16>
    %cst = arith.constant dense<0.000000e+00> : vector<32x128xf32>
    %2 = tpu.matmul %0, %1, %cst {dimension_numbers = #tpu.dot_dimension_numbers<[1], [0], [0], [1], [0, 0, 1, 1], [], []>} : vector<32x128xbf16>, vector<128x128xbf16>, vector<32x128xf32> -> vector<32x128xf32>
    %c0_3 = arith.constant 0 : index
    %c0_4 = arith.constant 0 : index
    %3 = vector.load %arg5[%c0_3, %c0_4] : memref<32x128xf32, #tpu.memory_space<vmem>>, vector<32x128xf32>
    tpu.vector_store %arg5[%c0_3, %c0_4], %2 {strides = array<i32>} : memref<32x128xf32, #tpu.memory_space<vmem>>, vector<32x128xf32>,
    %c0_i32 = arith.constant 0 : i32
    %4 = arith.cmpi eq, %arg0, %c0_i32 : i32
    %5 = arith.extui %4 : i1 to i32
    %c0_i32_5 = arith.constant 0 : i32
    %6 = arith.cmpi ne, %5, %c0_i32_5 : i32
    scf.if %6 {
      %cst_18 = arith.constant 0.000000e+00 : f32
      %21 = vector.broadcast %cst_18 : f32 to vector<1x128xf32>
      %c0_19 = arith.constant 0 : index
      %c0_20 = arith.constant 0 : index
      %22 = vector.load %arg7[%c0_19, %c0_20] : memref<1x128xf32, #tpu.memory_space<vmem>>, vector<1x128xf32>
      tpu.vector_store %arg7[%c0_19, %c0_20], %21 {strides = array<i32>} : memref<1x128xf32, #tpu.memory_space<vmem>>, vector<1x128xf32>,
      %cst_21 = arith.constant 0.000000e+00 : f32
      %23 = vector.broadcast %cst_21 : f32 to vector<1x128xf32>
      %c0_22 = arith.constant 0 : index
      %c0_23 = arith.constant 0 : index
      %24 = vector.load %arg8[%c0_22, %c0_23] : memref<1x128xf32, #tpu.memory_space<vmem>>, vector<1x128xf32>
      tpu.vector_store %arg8[%c0_22, %c0_23], %23 {strides = array<i32>} : memref<1x128xf32, #tpu.memory_space<vmem>>, vector<1x128xf32>,
    } else {
    }
    %c0_6 = arith.constant 0 : index
    %c0_7 = arith.constant 0 : index
    %7 = vector.load %arg7[%c0_6, %c0_7] : memref<1x128xf32, #tpu.memory_space<vmem>>, vector<1x128xf32>
    %cst_8 = arith.constant dense<0.000000e+00> : vector<128xf32>
    %8 = vector.multi_reduction <add>, %2, %cst_8 [0] : vector<32x128xf32> to vector<128xf32>
    %9 = vector.shape_cast %8 : vector<128xf32> to vector<1x128xf32>
    %10 = arith.addf %7, %9 : vector<1x128xf32>
    %c0_9 = arith.constant 0 : index
    %c0_10 = arith.constant 0 : index
    %11 = vector.load %arg7[%c0_9, %c0_10] : memref<1x128xf32, #tpu.memory_space<vmem>>, vector<1x128xf32>
    tpu.vector_store %arg7[%c0_9, %c0_10], %10 {strides = array<i32>} : memref<1x128xf32, #tpu.memory_space<vmem>>, vector<1x128xf32>,
    %c0_11 = arith.constant 0 : index
    %c0_12 = arith.constant 0 : index
    %12 = vector.load %arg8[%c0_11, %c0_12] : memref<1x128xf32, #tpu.memory_space<vmem>>, vector<1x128xf32>
    %13 = arith.mulf %2, %2 : vector<32x128xf32>
    %cst_13 = arith.constant dense<0.000000e+00> : vector<128xf32>
    %14 = vector.multi_reduction <add>, %13, %cst_13 [0] : vector<32x128xf32> to vector<128xf32>
    %15 = vector.shape_cast %14 : vector<128xf32> to vector<1x128xf32>
    %16 = arith.addf %12, %15 : vector<1x128xf32>
    %c0_14 = arith.constant 0 : index
    %c0_15 = arith.constant 0 : index
    %17 = vector.load %arg8[%c0_14, %c0_15] : memref<1x128xf32, #tpu.memory_space<vmem>>, vector<1x128xf32>
    tpu.vector_store %arg8[%c0_14, %c0_15], %16 {strides = array<i32>} : memref<1x128xf32, #tpu.memory_space<vmem>>, vector<1x128xf32>,
    %c0_i32_16 = arith.constant 0 : i32
    %18 = arith.cmpi eq, %arg0, %c0_i32_16 : i32
    %19 = arith.extui %18 : i1 to i32
    %c0_i32_17 = arith.constant 0 : i32
    %20 = arith.cmpi ne, %19, %c0_i32_17 : i32
    scf.if %20 {
      %c0_18 = arith.constant 0 : index
      %c0_19 = arith.constant 0 : index
      %21 = vector.load %arg7[%c0_18, %c0_19] : memref<1x128xf32, #tpu.memory_space<vmem>>, vector<1x128xf32>
      %cst_20 = arith.constant 3.125000e-02 : f32
      %22 = vector.broadcast %cst_20 : f32 to vector<1x128xf32>
      %23 = arith.mulf %21, %22 : vector<1x128xf32>
      %c0_21 = arith.constant 0 : index
      %c0_22 = arith.constant 0 : index
      %24 = vector.load %arg8[%c0_21, %c0_22] : memref<1x128xf32, #tpu.memory_space<vmem>>, vector<1x128xf32>
      %cst_23 = arith.constant 3.125000e-02 : f32
      %25 = vector.broadcast %cst_23 : f32 to vector<1x128xf32>
      %26 = arith.mulf %24, %25 : vector<1x128xf32>
      %27 = arith.mulf %23, %23 : vector<1x128xf32>
      %28 = arith.subf %26, %27 : vector<1x128xf32>
      %c0_24 = arith.constant 0 : index
      %c0_25 = arith.constant 0 : index
      %29 = vector.load %arg3[%c0_24, %c0_25] : memref<1x128xf32, #tpu.memory_space<vmem>>, vector<1x128xf32>
      %cst_26 = arith.constant 9.99999974E-6 : f32
      %30 = vector.broadcast %cst_26 : f32 to vector<1x128xf32>
      %31 = arith.addf %28, %30 : vector<1x128xf32>
      %32 = math.rsqrt %31 : vector<1x128xf32>
      %33 = arith.mulf %29, %32 : vector<1x128xf32>
      %c0_27 = arith.constant 0 : index
      %c0_28 = arith.constant 0 : index
      %34 = vector.load %arg4[%c0_27, %c0_28] : memref<1x128xf32, #tpu.memory_space<vmem>>, vector<1x128xf32>
      %35 = arith.mulf %23, %33 : vector<1x128xf32>
      %36 = arith.subf %34, %35 : vector<1x128xf32>
      %37 = tpu.concatenate %33, %36 in 0 : vector<1x128xf32>, vector<1x128xf32> -> vector<2x128xf32>
      %c0_29 = arith.constant 0 : index
      %c0_30 = arith.constant 0 : index
      %38 = vector.load %arg6[%c0_29, %c0_30] : memref<2x128xf32, #tpu.memory_space<vmem>>, vector<2x128xf32>
      tpu.vector_store %arg6[%c0_29, %c0_30], %37 {strides = array<i32>} : memref<2x128xf32, #tpu.memory_space<vmem>>, vector<2x128xf32>,
    } else {
    }
    return
  }
  func.func @transform_0(%arg0: i32) -> (i32, i32) {
    %c0_i32 = arith.constant 0 : i32
    %c0_i32_0 = arith.constant 0 : i32
    return %arg0, %c0_i32 : i32, i32
  }
  func.func @transform_1(%arg0: i32) -> (i32, i32) {
    %c0_i32 = arith.constant 0 : i32
    %c0_i32_0 = arith.constant 0 : i32
    %c0_i32_1 = arith.constant 0 : i32
    return %c0_i32, %c0_i32_0 : i32, i32
  }
  func.func @transform_2(%arg0: i32) -> (i32, i32) {
    %c0_i32 = arith.constant 0 : i32
    %c0_i32_0 = arith.constant 0 : i32
    %c0_i32_1 = arith.constant 0 : i32
    return %c0_i32, %c0_i32_0 : i32, i32
  }
  func.func @transform_3(%arg0: i32) -> (i32, i32) {
    %c0_i32 = arith.constant 0 : i32
    %c0_i32_0 = arith.constant 0 : i32
    %c0_i32_1 = arith.constant 0 : i32
    return %c0_i32, %c0_i32_0 : i32, i32
  }
  func.func @transform_4(%arg0: i32) -> (i32, i32) {
    %c0_i32 = arith.constant 0 : i32
    %c0_i32_0 = arith.constant 0 : i32
    return %arg0, %c0_i32 : i32, i32
  }
  func.func @transform_5(%arg0: i32) -> (i32, i32) {
    %c0_i32 = arith.constant 0 : i32
    %c0_i32_0 = arith.constant 0 : i32
    %c0_i32_1 = arith.constant 0 : i32
    return %c0_i32, %c0_i32_0 : i32, i32
  }
}

module attributes {stable_mosaic.version = 11 : i64} {
  func.func @_matmul_act_kernel(%arg0: i32, %arg1: memref<16x256xbf16, #tpu.memory_space<vmem>>, %arg2: memref<256x128xbf16, #tpu.memory_space<vmem>>, %arg3: memref<16x128xf32, #tpu.memory_space<vmem>>) attributes {dimension_semantics = [#tpu.dimension_semantics<parallel>], iteration_bounds = array<i64: 1>, scalar_prefetch = 0 : i64, scratch_operands = 0 : i64, tpu.core_type = #tpu.core_type<tc>, window_params = [{transform_indices = @transform_0, window_bounds = array<i64: 16, 256>}, {pipeline_mode = #tpu.pipeline_mode<synchronous>, transform_indices = @transform_1, window_bounds = array<i64: 256, 128>}, {transform_indices = @transform_2, window_bounds = array<i64: 16, 128>}]} {
    %c0 = arith.constant 0 : index
    %c0_0 = arith.constant 0 : index
    %0 = vector.load %arg1[%c0, %c0_0] : memref<16x256xbf16, #tpu.memory_space<vmem>>, vector<16x256xbf16>
    %c0_1 = arith.constant 0 : index
    %c0_2 = arith.constant 0 : index
    %1 = vector.load %arg2[%c0_1, %c0_2] : memref<256x128xbf16, #tpu.memory_space<vmem>>, vector<256x128xbf16>
    %cst = arith.constant dense<0.000000e+00> : vector<16x128xf32>
    %2 = tpu.matmul %0, %1, %cst {dimension_numbers = #tpu.dot_dimension_numbers<[1], [0], [0], [1], [0, 0, 1, 1], [], []>} : vector<16x256xbf16>, vector<256x128xbf16>, vector<16x128xf32> -> vector<16x128xf32>
    %3 = arith.negf %2 : vector<16x128xf32>
    %4 = math.exp %3 : vector<16x128xf32>
    %cst_3 = arith.constant 1.000000e+00 : f32
    %5 = vector.broadcast %cst_3 : f32 to vector<16x128xf32>
    %6 = arith.addf %5, %4 : vector<16x128xf32>
    %7 = arith.divf %5, %6 : vector<16x128xf32>
    %c0_4 = arith.constant 0 : index
    %c0_5 = arith.constant 0 : index
    %8 = vector.load %arg3[%c0_4, %c0_5] : memref<16x128xf32, #tpu.memory_space<vmem>>, vector<16x128xf32>
    tpu.vector_store %arg3[%c0_4, %c0_5], %7 {strides = array<i32>} : memref<16x128xf32, #tpu.memory_space<vmem>>, vector<16x128xf32>,
    return
  }
  func.func @transform_0(%arg0: i32) -> (i32, i32) {
    %c0_i32 = arith.constant 0 : i32
    %c0_i32_0 = arith.constant 0 : i32
    return %arg0, %c0_i32 : i32, i32
  }
  func.func @transform_1(%arg0: i32) -> (i32, i32) {
    %c0_i32 = arith.constant 0 : i32
    %c0_i32_0 = arith.constant 0 : i32
    %c0_i32_1 = arith.constant 0 : i32
    return %c0_i32, %c0_i32_0 : i32, i32
  }
  func.func @transform_2(%arg0: i32) -> (i32, i32) {
    %c0_i32 = arith.constant 0 : i32
    %c0_i32_0 = arith.constant 0 : i32
    return %arg0, %c0_i32 : i32, i32
  }
}

</mosaic_0001>

<bundles_post_ra>
// kernel: discriminator_forward.4
= control target key start
LH: loop header
LB: loop body
LE: loop exit
PB: predicated region body
PF: predicated region fallthrough
CT: control target
= control target key end

     0   :  { %s634_s1 = inlined_call_operand.vmem [shape: bf16[128,128], index: 1, kind: input, shape index: {}]   ;;  %s635_s0 = inlined_call_operand.vmem [shape: bf16[128,128], index: 0, kind: input, shape index: {}]   ;;  %s636_s2 = inlined_call_operand.vmem [shape: bf16[128,128], index: 2, kind: output, shape index: {}]  }
   0x1   :  { %v528_v0 = vld [vmem:[%s634_s1 + $0x38] sm:$0xff]   ;;  %v529_v1 = vld [vmem:[%s634_s1 + $0x30] sm:$0xff]   ;;  %v530_v2 = vld [vmem:[%s634_s1 + $0x28] sm:$0xff]  }
   0x2   :  { %480 = vmatprep.subr.bf16.mxu0 %v528_v0  ;;  %512 = vmatprep.subr.bf16.mxu1 %v528_v0  ;;  %v531_v3 = vld [vmem:[%s634_s1 + $0x20] sm:$0xff]   ;;  %v532_v6 = vld [vmem:[%s634_s1 + $0x18] sm:$0xff]   ;;  %v533_v7 = vld [vmem:[%s634_s1 + $0x10] sm:$0xff]  }
   0x3   :  { %481 = vmatpush3.bf16.msra.mxu0 %v528_v0  ;;  %520 = vmatpush3.bf16.msra.mxu1 %v528_v0  ;;  %v536_v4 = vld [vmem:[%s635_s0] sm:$0xff]   ;;  %v534_v8 = vld [vmem:[%s634_s1 + $0x8] sm:$0xff]   ;;  %v540_v12 = vld [vmem:[%s635_s0 + $0x10] sm:$0xff]  }
   0x4   :  { %482 = vmatprep.subr.bf16.mxu0 %v529_v1  ;;  %513 = vmatprep.subr.bf16.mxu1 %v529_v1  ;;  %v537_v5 = vld [vmem:[%s635_s0 + $0x20] sm:$0xff]   ;;  %v538_v10 = vld [vmem:[%s635_s0 + $0x8] sm:$0xff]   ;;  %v541_v13 = vld [vmem:[%s635_s0 + $0x30] sm:$0xff]  }
   0x5   :  { %496 = vmatprep.mubr.bf16.mxu0 %v536_v4  ;;  %504 = vmatprep.mubr.bf16.mxu1 %v537_v5  ;;  %v535_v9 = vld [vmem:[%s634_s1] sm:$0xff]   ;;  %v539_v11 = vld [vmem:[%s635_s0 + $0x28] sm:$0xff]   ;;  %v542_v14 = vld [vmem:[%s635_s0 + $0x18] sm:$0xff]  }
   0x6   :  { %v543_v15 = vld [vmem:[%s635_s0 + $0x38] sm:$0xff]  }
   0x7   :  { %483 = vmatpush3.bf16.msra.mxu0 %v529_v1  ;;  %521 = vmatpush3.bf16.msra.mxu1 %v529_v1 }
   0x8   :  { %484 = vmatprep.subr.bf16.mxu0 %v530_v2  ;;  %514 = vmatprep.subr.bf16.mxu1 %v530_v2 }
   0xb   :  { %485 = vmatpush3.bf16.msra.mxu0 %v530_v2  ;;  %522 = vmatpush3.bf16.msra.mxu1 %v530_v2 }
   0xc   :  { %486 = vmatprep.subr.bf16.mxu0 %v531_v3  ;;  %515 = vmatprep.subr.bf16.mxu1 %v531_v3 }
   0xf   :  { %487 = vmatpush3.bf16.msra.mxu0 %v531_v3  ;;  %523 = vmatpush3.bf16.msra.mxu1 %v531_v3 }
  0x10   :  { %488 = vmatprep.subr.bf16.mxu0 %v532_v6  ;;  %516 = vmatprep.subr.bf16.mxu1 %v532_v6 }
  0x13   :  { %489 = vmatpush3.bf16.msra.mxu0 %v532_v6  ;;  %524 = vmatpush3.bf16.msra.mxu1 %v532_v6 }
  0x14   :  { %490 = vmatprep.subr.bf16.mxu0 %v533_v7  ;;  %517 = vmatprep.subr.bf16.mxu1 %v533_v7 }
  0x17   :  { %491 = vmatpush3.bf16.msra.mxu0 %v533_v7  ;;  %525 = vmatpush3.bf16.msra.mxu1 %v533_v7 }
  0x18   :  { %492 = vmatprep.subr.bf16.mxu0 %v534_v8  ;;  %518 = vmatprep.subr.bf16.mxu1 %v534_v8 }
  0x1b   :  { %493 = vmatpush3.bf16.msra.mxu0 %v534_v8  ;;  %526 = vmatpush3.bf16.msra.mxu1 %v534_v8 }
  0x1c   :  { %494 = vmatprep.subr.bf16.mxu0 %v535_v9  ;;  %519 = vmatprep.subr.bf16.mxu1 %v535_v9 }
  0x1f   :  { %495 = vmatpush3.bf16.msra.mxu0 %v535_v9  ;;  %527 = vmatpush3.bf16.msra.mxu1 %v535_v9 }
  0x22   :  { %497 = vmatmul.mubr.bf16.vlgmr.msra.gmra.mxu0 %v538_v10  ;;  %505 = vmatmul.mubr.bf16.vlgmr.msra.gmra.mxu1 %v539_v11 }
  0x23   :  { %500 = vmatprep.mubr.bf16.mxu0 %v540_v12  ;;  %508 = vmatprep.mubr.bf16.mxu1 %v541_v13 }
  0x2a   :  { %501 = vmatmul.mubr.bf16.gmra.mxu0 %v542_v14  ;;  %509 = vmatmul.mubr.bf16.gmra.mxu1 %v543_v15 }
  0xe2   :  { %v498_v16 = vpop.f32.mrf.mxu0  ;;  %v506_v17 = vpop.f32.mrf.mxu1 }
  0xe3   :  { %vm239_vm0 = vcmp.ge.f32.partialorder %v498_v16, 0.0  ;;  %v255_v18 = vmul.f32 0.2, %v498_v16  ;;  %v263_v19 = vmul.f32 0.2, %v506_v17  ;;  %vm247_vm1 = vcmp.ge.f32.partialorder %v506_v17, 0.0 }
  0xe4   :  { %v174_v20 = vpop.f32.mrf.mxu0  ;;  %v206_v21 = vpop.f32.mrf.mxu1 }
  0xe5   :  { %v271_v22 = vsel %vm239_vm0, %v498_v16, %v255_v18  ;;  %v253_v23 = vmul.f32 0.2, %v174_v20  ;;  %vm237_vm2 = vcmp.ge.f32.partialorder %v174_v20, 0.0  ;;  %v279_v27 = vsel %vm247_vm1, %v506_v17, %v263_v19 }
  0xe6   :  { %v499_v24 = vpop.f32.mrf.mxu0  ;;  %v507_v25 = vpop.f32.mrf.mxu1  ;;  %vm245_vm5 = vcmp.ge.f32.partialorder %v206_v21, 0.0  ;;  %v261_v28 = vmul.f32 0.2, %v206_v21 }
  0xe7   :  { %vm240_vm3 = vcmp.ge.f32.partialorder %v499_v24, 0.0  ;;  %v256_v26 = vmul.f32 0.2, %v499_v24  ;;  %vm248_vm4 = vcmp.ge.f32.partialorder %v507_v25, 0.0  ;;  %v264_v29 = vmul.f32 0.2, %v507_v25 }
  0xe8   :  { %v177_v30 = vpop.f32.mrf.mxu0  ;;  %v209_v31 = vpop.f32.mrf.mxu1  ;;  %v269_v34 = vsel %vm237_vm2, %v174_v20, %v253_v23  ;;  %v277_v43 = vsel %vm245_vm5, %v206_v21, %v261_v28 }
  0xe9   :  { %v272_v32 = vsel %vm240_vm3, %v499_v24, %v256_v26  ;;  %vm238_vm6 = vcmp.ge.f32.partialorder %v177_v30, 0.0  ;;  %v254_v33 = vmul.f32 0.2, %v177_v30  ;;  %vm246_vm7 = vcmp.ge.f32.partialorder %v209_v31, 0.0 }
  0xea   :  { %v425_v35 = vpack.c.bf16 %v272_v32, %v271_v22  ;;  %v280_v36 = vsel %vm248_vm4, %v507_v25, %v264_v29  ;;  %v262_v37 = vmul.f32 0.2, %v209_v31  ;;  %v502_v38 = vpop.f32.mrf.mxu0  ;;  %v510_v39 = vpop.f32.mrf.mxu1 }
  0xeb   :  { %v445_v40 = vpack.c.bf16 %v280_v36, %v279_v27  ;;  %v270_v41 = vsel %vm238_vm6, %v177_v30, %v254_v33  ;;  %vm243_vm8 = vcmp.ge.f32.partialorder %v502_v38, 0.0  ;;  %v259_v42 = vmul.f32 0.2, %v502_v38 }
  0xec   :  { %457 = vst [vmem:[%s636_s2 + $0x8] sm:$0xff] %v425_v35   ;;  %v420_v44 = vpack.c.bf16 %v270_v41, %v269_v34  ;;  %v278_v45 = vsel %vm246_vm7, %v209_v31, %v262_v37  ;;  %v190_v46 = vpop.f32.mrf.mxu0  ;;  %v222_v47 = vpop.f32.mrf.mxu1  ;;  %vm251_vm9 = vcmp.ge.f32.partialorder %v510_v39, 0.0  ;;  %v267_v50 = vmul.f32 0.2, %v510_v39 }
  0xed   :  { %461 = vst [vmem:[%s636_s2 + $0x28] sm:$0xff] %v445_v40   ;;  %v440_v48 = vpack.c.bf16 %v278_v45, %v277_v43  ;;  %v275_v49 = vsel %vm243_vm8, %v502_v38, %v259_v42  ;;  %v257_v53 = vmul.f32 0.2, %v190_v46  ;;  %vm241_vm12 = vcmp.ge.f32.partialorder %v190_v46, 0.0 }
  0xee   :  { %421 = vst [vmem:[%s636_s2] sm:$0xff] %v420_v44   ;;  %v503_v51 = vpop.f32.mrf.mxu0  ;;  %v511_v52 = vpop.f32.mrf.mxu1  ;;  %vm249_vm13 = vcmp.ge.f32.partialorder %v222_v47, 0.0  ;;  %v265_v55 = vmul.f32 0.2, %v222_v47  ;;  %v283_v61 = vsel %vm251_vm9, %v510_v39, %v267_v50 }
  0xef   :  { %460 = vst [vmem:[%s636_s2 + $0x20] sm:$0xff] %v440_v48   ;;  %vm244_vm10 = vcmp.ge.f32.partialorder %v503_v51, 0.0  ;;  %v260_v54 = vmul.f32 0.2, %v503_v51  ;;  %vm252_vm11 = vcmp.ge.f32.partialorder %v511_v52, 0.0  ;;  %v273_v1 = vsel %vm241_vm12, %v190_v46, %v257_v53 }
  0xf0   :  { %v268_v56 = vmul.f32 0.2, %v511_v52  ;;  %v193_v57 = vpop.f32.mrf.mxu0  ;;  %v225_v58 = vpop.f32.mrf.mxu1  ;;  %v281_v4 = vsel %vm249_vm13, %v222_v47, %v265_v55 }
  0xf1   :  { %v276_v59 = vsel %vm244_vm10, %v503_v51, %v260_v54  ;;  %vm242_vm14 = vcmp.ge.f32.partialorder %v193_v57, 0.0  ;;  %v258_v60 = vmul.f32 0.2, %v193_v57  ;;  %vm250_vm15 = vcmp.ge.f32.partialorder %v225_v58, 0.0 }
  0xf2   :  { %v435_v62 = vpack.c.bf16 %v276_v59, %v275_v49  ;;  %v284_v63 = vsel %vm252_vm11, %v511_v52, %v268_v56  ;;  %v266_v0 = vmul.f32 0.2, %v225_v58 }
  0xf3   :  { %v455_v2 = vpack.c.bf16 %v284_v63, %v283_v61  ;;  %v274_v3 = vsel %vm242_vm14, %v193_v57, %v258_v60 }
  0xf4   :  { %459 = vst [vmem:[%s636_s2 + $0x18] sm:$0xff] %v435_v62   ;;  %v430_v5 = vpack.c.bf16 %v274_v3, %v273_v1  ;;  %v282_v6 = vsel %vm250_vm15, %v225_v58, %v266_v0 }
  0xf5   :  { %463 = vst [vmem:[%s636_s2 + $0x38] sm:$0xff] %v455_v2   ;;  %v450_v7 = vpack.c.bf16 %v282_v6, %v281_v4 }
  0xf6   :  { %458 = vst [vmem:[%s636_s2 + $0x10] sm:$0xff] %v430_v5  }
  0xf7   :  { %462 = vst [vmem:[%s636_s2 + $0x30] sm:$0xff] %v450_v7  }

// kernel: discriminator_forward.6
= control target key start
LH: loop header
LB: loop body
LE: loop exit
PB: predicated region body
PF: predicated region fallthrough
CT: control target
= control target key end

     0   :  { %s129_s0 = inlined_call_operand.vmem [shape: f32[32,128], index: 0, kind: input, shape index: {}]   ;;  %s130_s1 = inlined_call_operand.vmem [shape: f32[2,128], index: 1, kind: input, shape index: {}]   ;;  %s131_s2 = inlined_call_operand.vmem [shape: bf16[32,128], index: 2, kind: output, shape index: {}]  }
   0x1   :  { %v11_v0 = vld [vmem:[%s129_s0] sm:$0xff]  ;;  %v12_v1 = vld [vmem:[%s129_s0 + $0x8] sm:$0xff]  ;;  %v13_v6 = vld [vmem:[%s129_s0 + $0x10] sm:$0xff] }
   0x2   :  { %v69_v2 = vld [vmem:[%s130_s1] ss:$0 sm:$0xff]  ;;  %v70_v3 = vld [vmem:[%s130_s1 + $0x1] ss:$0 sm:$0xff]  ;;  %v14_v7 = vld [vmem:[%s129_s0 + $0x18] sm:$0xff] }
   0x3   :  { %v21_v4 = vmul.f32 %v69_v2, %v11_v0  ;;  %v22_v5 = vmul.f32 %v69_v2, %v12_v1  ;;  %v23_v8 = vmul.f32 %v69_v2, %v13_v6  ;;  %v24_v9 = vmul.f32 %v69_v2, %v14_v7 }
   0x5   :  { %v29_v10 = vadd.f32 %v70_v3, %v21_v4  ;;  %v30_v11 = vadd.f32 %v70_v3, %v22_v5  ;;  %v31_v12 = vadd.f32 %v70_v3, %v23_v8  ;;  %v32_v13 = vadd.f32 %v70_v3, %v24_v9 }
   0x7   :  { %vm33_vm0 = vcmp.ge.f32.partialorder %v29_v10, 0.0  ;;  %vm34_vm1 = vcmp.ge.f32.partialorder %v30_v11, 0.0  ;;  %v37_v14 = vmul.f32 0.2, %v29_v10  ;;  %v38_v15 = vmul.f32 0.2, %v30_v11 }
   0x8   :  { %vm35_vm2 = vcmp.ge.f32.partialorder %v31_v12, 0.0  ;;  %vm36_vm3 = vcmp.ge.f32.partialorder %v32_v13, 0.0  ;;  %v39_v16 = vmul.f32 0.2, %v31_v12  ;;  %v40_v17 = vmul.f32 0.2, %v32_v13 }
   0x9   :  { %v41_v18 = vsel %vm33_vm0, %v29_v10, %v37_v14  ;;  %v42_v19 = vsel %vm34_vm1, %v30_v11, %v38_v15 }
   0xa   :  { %v82_v20 = vpack.c.bf16 %v42_v19, %v41_v18  ;;  %v43_v21 = vsel %vm35_vm2, %v31_v12, %v39_v16  ;;  %v44_v22 = vsel %vm36_vm3, %v32_v13, %v40_v17 }
   0xb   :  { %v87_v23 = vpack.c.bf16 %v44_v22, %v43_v21 }
   0xc   :  { %83 = vst [vmem:[%s131_s2] sm:$0xff] %v82_v20  }
   0xd   :  { %89 = vst [vmem:[%s131_s2 + $0x8] sm:$0xff] %v87_v23  }

// kernel: discriminator_forward.5
= control target key start
LH: loop header
LB: loop body
LE: loop exit
PB: predicated region body
PF: predicated region fallthrough
CT: control target
= control target key end

     0   :  { %v273_v10 = vmov 0.0   ;;  %v204_v48 = vlaneseq  ;;  %vm209_vm0 = vcmask 1040384   ;;  %s355_s1 = inlined_call_operand.vmem [shape: bf16[128,128], index: 1, kind: input, shape index: {}]   ;;  %s356_s0 = inlined_call_operand.vmem [shape: bf16[32,128], index: 0, kind: input, shape index: {}]   ;;  %s357_s4 = inlined_call_operand.vmem [shape: f32[32,128], index: 4, kind: output, shape index: {0}]   ;;  %s358_s2 = inlined_call_operand.vmem [shape: f32[1,128], index: 2, kind: input, shape index: {}]   ;;  %s359_s3 = inlined_call_operand.vmem [shape: f32[1,128], index: 3, kind: input, shape index: {}]   ;;  %s360_s5 = inlined_call_operand.vmem [shape: f32[2,128], index: 5, kind: output, shape index: {1}]  }
   0x1   :  { %v261_v0 = vld [vmem:[%s355_s1 + $0x38] sm:$0xff]   ;;  %v262_v1 = vld [vmem:[%s355_s1 + $0x30] sm:$0xff]   ;;  %v263_v2 = vld [vmem:[%s355_s1 + $0x28] sm:$0xff]   ;;  %157 = vst [vmem:[#allocation2] sm:$0x1] %v273_v10 }
   0x2   :  { %240 = vmatprep.subr.bf16.mxu0 %v261_v0  ;;  %v264_v3 = vld [vmem:[%s355_s1 + $0x20] sm:$0xff]   ;;  %v265_v5 = vld [vmem:[%s355_s1 + $0x18] sm:$0xff]   ;;  %v266_v6 = vld [vmem:[%s355_s1 + $0x10] sm:$0xff]   ;;  %158 = vst [vmem:[#allocation3] sm:$0x1] %v273_v10  ;;  %v205_v50 = vshrl.u32 %v204_v48, 7 }
   0x3   :  { %241 = vmatpush3.bf16.msra.mxu0 %v261_v0  ;;  %v269_v4 = vld [vmem:[%s356_s0] sm:$0xff]   ;;  %v267_v7 = vld [vmem:[%s355_s1 + $0x8] sm:$0xff]  }
   0x4   :  { %242 = vmatprep.subr.bf16.mxu0 %v262_v1  ;;  %256 = vmatprep.mubr.bf16.mxu0 %v269_v4  ;;  %v268_v8 = vld [vmem:[%s355_s1] sm:$0xff]   ;;  %v270_v9 = vld [vmem:[%s356_s0 + $0x8] sm:$0xff]   ;;  %v206_v55 = vsub.s32 0, %v205_v50 }
   0x5   :  { %v196_v49 = vld [vmem:[%s358_s2] sm:$0x1] }
   0x6   :  { %v200_v53 = vld [vmem:[%s359_s3] sm:$0x1] }
   0x7   :  { %243 = vmatpush3.bf16.msra.mxu0 %v262_v1 }
   0x8   :  { %244 = vmatprep.subr.bf16.mxu0 %v263_v2  ;;  %v159_v34 = vld [vmem:[#allocation2] sm:$0x1] }
   0x9   :  { %v171_v37 = vld [vmem:[#allocation3] sm:$0x1] }
   0xb   :  { %245 = vmatpush3.bf16.msra.mxu0 %v263_v2 }
   0xc   :  { %246 = vmatprep.subr.bf16.mxu0 %v264_v3 }
   0xf   :  { %247 = vmatpush3.bf16.msra.mxu0 %v264_v3 }
  0x10   :  { %248 = vmatprep.subr.bf16.mxu0 %v265_v5 }
  0x13   :  { %249 = vmatpush3.bf16.msra.mxu0 %v265_v5 }
  0x14   :  { %250 = vmatprep.subr.bf16.mxu0 %v266_v6 }
  0x17   :  { %251 = vmatpush3.bf16.msra.mxu0 %v266_v6 }
  0x18   :  { %252 = vmatprep.subr.bf16.mxu0 %v267_v7 }
  0x1b   :  { %253 = vmatpush3.bf16.msra.mxu0 %v267_v7 }
  0x1c   :  { %254 = vmatprep.subr.bf16.mxu0 %v268_v8 }
  0x1f   :  { %255 = vmatpush3.bf16.msra.mxu0 %v268_v8 }
  0x22   :  { %257 = vmatmul.mubr.bf16.vlgmr.msra.gmra.mxu0 %v270_v9 }
  0xe2   :  { %v258_v11 = vpop.f32.mrf.mxu0 }
  0xe3   :  { %151 = vst [vmem:[%s357_s4 + $0x10] sm:$0xff] %v258_v11  ;;  %v174_v18 = vmul.f32 %v258_v11, %v258_v11 }
  0xe4   :  { %v134_v12 = vpop.f32.mrf.mxu0 }
  0xe5   :  { %149 = vst [vmem:[%s357_s4] sm:$0xff] %v134_v12  ;;  %v172_v15 = vmul.f32 %v134_v12, %v134_v12 }
  0xe6   :  { %v259_v13 = vpop.f32.mrf.mxu0 }
  0xe7   :  { %152 = vst [vmem:[%s357_s4 + $0x18] sm:$0xff] %v259_v13  ;;  %v175_v21 = vmul.f32 %v259_v13, %v259_v13 }
  0xe8   :  { %v137_v14 = vpop.f32.mrf.mxu0 }
  0xe9   :  { %150 = vst [vmem:[%s357_s4 + $0x8] sm:$0xff] %v137_v14  ;;  %v160_v16 = vadd.f32 %v137_v14, %v134_v12  ;;  %v173_v17 = vmul.f32 %v137_v14, %v137_v14 }
  0xeb   :  { %v161_v19 = vadd.f32 %v258_v11, %v160_v16  ;;  %v176_v20 = vadd.f32 %v173_v17, %v172_v15 }
  0xed   :  { %v162_v22 = vadd.f32 %v259_v13, %v161_v19  ;;  %v177_v23 = vadd.f32 %v176_v20, %v174_v18 }
  0xef   :  { %v163_v24 = vrot.slane %v162_v22, 4  ;;  %v178_v25 = vadd.f32 %v177_v23, %v175_v21 }
  0xf1   :  { %v164_v26 = vadd.f32 %v163_v24, %v162_v22  ;;  %v179_v27 = vrot.slane %v178_v25, 4 }
  0xf3   :  { %v165_v28 = vrot.slane %v164_v26, 2  ;;  %v180_v29 = vadd.f32 %v179_v27, %v178_v25 }
  0xf5   :  { %v166_v30 = vadd.f32 %v165_v28, %v164_v26  ;;  %v181_v31 = vrot.slane %v180_v29, 2 }
  0xf7   :  { %v167_v32 = vrot.slane %v166_v30, 1  ;;  %v182_v33 = vadd.f32 %v181_v31, %v180_v29 }
  0xf9   :  { %v168_v35 = vadd.f32 %v167_v32, %v166_v30  ;;  %v183_v36 = vrot.slane %v182_v33, 1 }
  0xfb   :  { %v169_v38 = vadd.f32 %v168_v35, %v159_v34  ;;  %v184_v39 = vadd.f32 %v183_v36, %v182_v33 }
  0xfd   :  { %170 = vst [vmem:[#allocation2] sm:$0x1] %v169_v38  ;;  %v185_v40 = vadd.f32 %v184_v39, %v171_v37 }
  0xff   :  { %186 = vst [vmem:[#allocation3] sm:$0x1] %v185_v40 }
 0x104   :  { %v190_v41 = vld [vmem:[#allocation2] sm:$0x1] }
 0x105   :  { %v191_v42 = vmul.f32 0.03125, %v190_v41 }
 0x106   :  { %v192_v43 = vld [vmem:[#allocation3] sm:$0x1] }
 0x107   :  { %v193_v44 = vmul.f32 0.03125, %v192_v43  ;;  %v194_v45 = vmul.f32 %v191_v42, %v191_v42 }
 0x109   :  { %v195_v46 = vsub.f32 %v193_v44, %v194_v45 }
 0x10b   :  { %v197_v47 = vadd.f32 1e-05, %v195_v46 }
 0x10d   :  { %271 = vrsqrt.f32 %v197_v47 }
 0x11a   :  { %v272_v51 = vpop.eup %271 }
 0x11b   :  { %v199_v52 = vmul.f32 %v272_v51, %v196_v49 }
 0x11d   :  { %v201_v54 = vmul.f32 %v199_v52, %v191_v42 }
 0x11f   :  { %v202_v56 = vsub.f32 %v200_v53, %v201_v54 }
 0x121   :  { %v207_v57 = vrot.slane %v202_v56, %v206_v55 }
 0x123   :  { %v210_v58 = vsel %vm209_vm0, %v199_v52, %v207_v57 }
 0x124   :  { %211 = vst [vmem:[%s360_s5] sm:$0x3] %v210_v58 }

// kernel: discriminator_forward.7
= control target key start
LH: loop header
LB: loop body
LE: loop exit
PB: predicated region body
PF: predicated region fallthrough
CT: control target
= control target key end

     0   :  { %s355_s1 = inlined_call_operand.vmem [shape: bf16[256,128], index: 1, kind: input, shape index: {}]   ;;  %s356_s0 = inlined_call_operand.vmem [shape: bf16[16,256], index: 0, kind: input, shape index: {}]   ;;  %s357_s2 = inlined_call_operand.vmem [shape: f32[16,128], index: 2, kind: output, shape index: {}]  }
   0x1   :  { %v253_v0 = vld [vmem:[%s355_s1 + $0x78] sm:$0xff]   ;;  %v255_v2 = vld [vmem:[%s355_s1 + $0x70] sm:$0xff]   ;;  %v257_v4 = vld [vmem:[%s355_s1 + $0x68] sm:$0xff]  }
   0x2   :  { %v254_v1 = vld [vmem:[%s355_s1 + $0x38] sm:$0xff]   ;;  %231 = vmatprep.subr.bf16.mxu0 %v253_v0  ;;  %v256_v3 = vld [vmem:[%s355_s1 + $0x30] sm:$0xff]   ;;  %v258_v5 = vld [vmem:[%s355_s1 + $0x28] sm:$0xff]  }
   0x3   :  { %232 = vmatpush3.bf16.msra.mxu0 %v254_v1  ;;  %v259_v6 = vld [vmem:[%s355_s1 + $0x60] sm:$0xff]   ;;  %v261_v8 = vld [vmem:[%s355_s1 + $0x58] sm:$0xff]   ;;  %v263_v10 = vld [vmem:[%s355_s1 + $0x50] sm:$0xff]  }
   0x4   :  { %233 = vmatprep.subr.bf16.mxu0 %v255_v2  ;;  %v260_v7 = vld [vmem:[%s355_s1 + $0x20] sm:$0xff]   ;;  %v262_v9 = vld [vmem:[%s355_s1 + $0x18] sm:$0xff]   ;;  %v264_v12 = vld [vmem:[%s355_s1 + $0x10] sm:$0xff]  }
   0x5   :  { %v271_v11 = vld [vmem:[%s356_s0 + $0x4] ss:$8 sps:$4 sm:$0xff]   ;;  %v269_v17 = vld [vmem:[%s356_s0] ss:$8 sps:$4 sm:$0xff]  }
   0x6   :  { %184 = vmatprep.mubr.bf16.mxu0 %v271_v11  ;;  %v265_v13 = vld [vmem:[%s355_s1 + $0x48] sm:$0xff]   ;;  %v267_v15 = vld [vmem:[%s355_s1 + $0x40] sm:$0xff]  }
   0x7   :  { %234 = vmatpush3.bf16.msra.mxu0 %v256_v3  ;;  %v266_v14 = vld [vmem:[%s355_s1 + $0x8] sm:$0xff]   ;;  %v268_v16 = vld [vmem:[%s355_s1] sm:$0xff]  }
   0x8   :  { %235 = vmatprep.subr.bf16.mxu0 %v257_v4 }
   0xb   :  { %236 = vmatpush3.bf16.msra.mxu0 %v258_v5 }
   0xc   :  { %237 = vmatprep.subr.bf16.mxu0 %v259_v6 }
   0xf   :  { %238 = vmatpush3.bf16.msra.mxu0 %v260_v7 }
  0x10   :  { %239 = vmatprep.subr.bf16.mxu0 %v261_v8 }
  0x13   :  { %240 = vmatpush3.bf16.msra.mxu0 %v262_v9 }
  0x14   :  { %241 = vmatprep.subr.bf16.mxu0 %v263_v10 }
  0x17   :  { %242 = vmatpush3.bf16.msra.mxu0 %v264_v12 }
  0x18   :  { %243 = vmatprep.subr.bf16.mxu0 %v265_v13 }
  0x1b   :  { %244 = vmatpush3.bf16.msra.mxu0 %v266_v14 }
  0x1c   :  { %245 = vmatprep.subr.bf16.mxu0 %v267_v15 }
  0x1f   :  { %246 = vmatpush3.bf16.msra.mxu0 %v268_v16 }
  0x22   :  { %185 = vmatmul.mubr.bf16.vlgmr.msra.gmra.mxu0 %v269_v17 }
  0xe2   :  { %v247_v18 = vpop.f32.mrf.mxu0 }
  0xe4   :  { %v248_v19 = vpop.f32.mrf.mxu0 }
  0xe5   :  { %v249_v20 = vadd.f32 %v248_v19, %v247_v18 }
  0xe6   :  { %v250_v21 = vpop.f32.mrf.mxu0 }
  0xe7   :  { %v229_v22 = vmul.f32 -1.442695, %v249_v20 }
  0xe8   :  { %v251_v23 = vpop.f32.mrf.mxu0 }
  0xe9   :  { %272 = vpow2.f32 %v229_v22  ;;  %v252_v24 = vadd.f32 %v251_v23, %v250_v21 }
  0xeb   :  { %v230_v25 = vmul.f32 -1.442695, %v252_v24 }
  0xed   :  { %274 = vpow2.f32 %v230_v25 }
  0xf6   :  { %v273_v26 = vpop.eup %272 }
  0xf7   :  { %v199_v27 = vadd.f32 1.0, %v273_v26 }
  0xf9   :  { %276 = vrcp.f32 %v199_v27 }
  0xfa   :  { %v275_v28 = vpop.eup %274 }
  0xfb   :  { %v200_v29 = vadd.f32 1.0, %v275_v28 }
  0xfd   :  { %278 = vrcp.f32 %v200_v29 }
 0x106   :  { %v277_v30 = vpop.eup %276 }
 0x107   :  { %205 = vst [vmem:[%s357_s2] sm:$0xff] %v277_v30 }
 0x10a   :  { %v279_v31 = vpop.eup %278 }
 0x10b   :  { %206 = vst [vmem:[%s357_s2 + $0x8] sm:$0xff] %v279_v31 }

</bundles_post_ra>
